<compile_context>
chip_gen: v6e
topology: v6e:2x2x1
jax: 0.10.0
libtpu: 0.0.40
codegen_flags: <defaults>
</compile_context>

<pallas_src>
import math

import jax
import jax.numpy as jnp
from jax.experimental import pallas as pl
from jax.experimental.pallas import tpu as pltpu


def _round_up(v, m):
    return (v + m - 1) // m * m


def encoder_kernel(x_ref, w1_ref, b1_ref, w2_ref, b2_ref, o_ref):
    # Linear(num_inputs -> 200) + ReLU. Hidden dim is zero-padded to 256
    # (padded bias is 0, so ReLU(0) = 0); the reduction dim K is unpadded.
    h = jnp.dot(x_ref[...], w1_ref[...], preferred_element_type=jnp.float32)
    h = jnp.maximum(h + b1_ref[...], 0.0)
    # Linear(200 -> 20), no activation. Padded hidden rows of w2 are zero.
    y = jnp.dot(h, w2_ref[...], preferred_element_type=jnp.float32)
    o_ref[...] = (y + b2_ref[...]).astype(o_ref.dtype)


_VMEM_BUDGET = 40 * 1024 * 1024    # conservative total (v7x has 64 MiB physical)
_X_BUF_TARGET = 8 * 1024 * 1024    # per x buffer; amortizes ~0.35us/step overhead


def _choose_batch_tile(B, K, N, weight_bytes, tb_max):
    """Pick a batch tile (multiple of 8) that is big enough to hide per-step
    overhead but keeps double-buffered x/out + resident weights in VMEM."""
    io_budget = max(_VMEM_BUDGET - 2 * weight_bytes, 1 << 20)
    per_row_io = 2 * (K + N) * 4                       # double-buffered x + out
    cap = min(io_budget // per_row_io, _X_BUF_TARGET // (K * 4))
    tb = min(_round_up(B, 8), tb_max, max(8, (cap // 8) * 8))
    # Keep >= 2 grid steps when the batch allows it, so the "parallel" batch
    # axis can be sharded across both TensorCores on v7x (free elsewhere).
    if B >= 16 and pl.cdiv(B, tb) < 2:
        tb = _round_up(pl.cdiv(B, 2), 8)
    return tb


def encoder_forward(x, w1, b1, w2, b2, *, tb_max=32768):
    """x: (B, num_inputs); w1: (num_inputs, 200); b1: (200,) or (1, 200);
    w2: (200, 20); b2: (20,) or (1, 20). Returns (B, 20) float32."""
    f32 = jnp.float32
    B, K = x.shape
    H = w1.shape[1]            # 200
    N = w2.shape[1]            # 20
    H_pad = _round_up(H, 128)  # 200 -> 256: keeps the hidden tile lane-dense

    # x is passed through untouched (no extra HBM pass over the big operand).
    if x.dtype != f32:
        x = x.astype(f32)

    # Tiny, one-time weight/bias padding of the hidden dim only (exact math).
    w1_p = jnp.pad(w1.astype(f32), ((0, 0), (0, H_pad - H)))
    b1_p = jnp.pad(jnp.reshape(b1, (1, H)).astype(f32), ((0, 0), (0, H_pad - H)))
    w2_p = jnp.pad(w2.astype(f32), ((0, H_pad - H), (0, 0)))
    b2_p = jnp.reshape(b2, (1, N)).astype(f32)

    weight_bytes = (K * H_pad + H_pad + H_pad * N + N) * 4
    TB = _choose_batch_tile(B, K, N, weight_bytes, tb_max)
    num_steps = pl.cdiv(B, TB)

    vmem_needed = 2 * (TB * K * 4 + TB * N * 4) + 2 * weight_bytes + (4 << 20)
    vmem_limit = int(min(60 << 20, max(vmem_needed, 32 << 20)))

    cost = pl.CostEstimate(
        flops=2 * B * (K * H_pad + H_pad * N),
        transcendentals=0,
        bytes_accessed=(B * K + B * N) * 4 + weight_bytes,
    )

    def build(single_buffer_weights):
        def resident(shape):
            # Grid-invariant operands (constant index_map) never need
            # double-buffering; single buffer halves their VMEM footprint.
            if single_buffer_weights:
                return pl.BlockSpec(shape, lambda i: (0, 0),
                                    pipeline_mode=pl.Buffered(1))
            return pl.BlockSpec(shape, lambda i: (0, 0))

        return pl.pallas_call(
            encoder_kernel,
            out_shape=jax.ShapeDtypeStruct((B, N), f32),
            grid=(num_steps,),
            in_specs=[
                pl.BlockSpec((TB, K), lambda i: (i, 0)),   # x: batch-tiled
                resident((K, H_pad)),                      # w1: VMEM-resident
                resident((1, H_pad)),                      # b1
                resident((H_pad, N)),                      # w2
                resident((1, N)),                          # b2
            ],
            out_specs=pl.BlockSpec((TB, N), lambda i: (i, 0)),
            compiler_params=pltpu.CompilerParams(
                dimension_semantics=("parallel",),
                vmem_limit_bytes=vmem_limit,
            ),
            cost_estimate=cost,
        )

    args = (x, w1_p, b1_p, w2_p, b2_p)
    try:
        return build(True)(*args)
    except Exception:
        # Fallback for Pallas versions without BlockSpec(pipeline_mode=...).
        return build(False)(*args)


def xavier_uniform(key, fan_in, fan_out, dtype=jnp.float32):
    """Matches nn.init.xavier_uniform_ on PyTorch's (out, in) weight; we
    generate the (in, out) transposed layout directly (the bound is symmetric
    in fan_in/fan_out, so the distribution is identical)."""
    bound = math.sqrt(6.0 / (fan_in + fan_out))
    return jax.random.uniform(
        key, (fan_in, fan_out), dtype=dtype, minval=-bound, maxval=bound
    )


def make_params(key, num_inputs):
    k1, k2 = jax.random.split(key)
    w1 = xavier_uniform(k1, num_inputs, 200)             # Linear(num_inputs, 200)
    b1 = jnp.full((1, 200), 0.01, dtype=jnp.float32)     # bias filled with 0.01
    w2 = xavier_uniform(k2, 200, 20)                     # Linear(200, 20)
    b2 = jnp.full((1, 20), 0.01, dtype=jnp.float32)
    return w1, b1, w2, b2


if __name__ == "__main__":
    key = jax.random.PRNGKey(0)
    k_x1, k_x2, k_params = jax.random.split(key, 3)

    num_inputs = 64  # gene dimension, kept small for the demo
    w1, b1, w2, b2 = make_params(k_params, num_inputs)

    def ref_fn(xv):
        return jnp.maximum(xv @ w1 + b1, 0.0) @ w2 + b2

    # Small tb_max forces a multi-step (pipelined, megacore-parallel) grid.
    x1 = jax.random.normal(k_x1, (32, num_inputs), dtype=jnp.float32)
    out1 = jax.block_until_ready(encoder_forward(x1, w1, b1, w2, b2, tb_max=8))
    assert out1.shape == (32, 20)
    assert jnp.allclose(out1, ref_fn(x1), atol=1e-5, rtol=1e-5)

    # Batch not a multiple of the tile: exercises the cdiv grid + masked edge
    # block (no wrapper-side batch padding or output slicing).
    x2 = jax.random.normal(k_x2, (37, num_inputs), dtype=jnp.float32)
    out2 = jax.block_until_ready(encoder_forward(x2, w1, b1, w2, b2))
    assert out2.shape == (37, 20)
    assert jnp.allclose(out2, ref_fn(x2), atol=1e-5, rtol=1e-5)

    print("KERNEL_OK")
</pallas_src>

<mosaic_0001>
module attributes {stable_mosaic.version = 11 : i64} {
  func.func @encoder_kernel(%arg0: i32, %arg1: memref<8x64xf32, #tpu.memory_space<vmem>>, %arg2: memref<64x256xf32, #tpu.memory_space<vmem>>, %arg3: memref<1x256xf32, #tpu.memory_space<vmem>>, %arg4: memref<256x20xf32, #tpu.memory_space<vmem>>, %arg5: memref<1x20xf32, #tpu.memory_space<vmem>>, %arg6: memref<8x20xf32, #tpu.memory_space<vmem>>) attributes {dimension_semantics = [#tpu.dimension_semantics<parallel>], iteration_bounds = array<i64: 4>, scalar_prefetch = 0 : i64, scratch_operands = 0 : i64, tpu.core_type = #tpu.core_type<tc>, window_params = [{transform_indices = @transform_0, window_bounds = array<i64: 8, 64>}, {pipeline_mode = #tpu.pipeline_mode<synchronous>, transform_indices = @transform_1, window_bounds = array<i64: 64, 256>}, {pipeline_mode = #tpu.pipeline_mode<synchronous>, transform_indices = @transform_2, window_bounds = array<i64: 1, 256>}, {pipeline_mode = #tpu.pipeline_mode<synchronous>, transform_indices = @transform_3, window_bounds = array<i64: 256, 20>}, {pipeline_mode = #tpu.pipeline_mode<synchronous>, transform_indices = @transform_4, window_bounds = array<i64: 1, 20>}, {transform_indices = @transform_5, window_bounds = array<i64: 8, 20>}]} {
    %c0 = arith.constant 0 : index
    %c0_0 = arith.constant 0 : index
    %0 = vector.load %arg1[%c0, %c0_0] : memref<8x64xf32, #tpu.memory_space<vmem>>, vector<8x64xf32>
    %c0_1 = arith.constant 0 : index
    %c0_2 = arith.constant 0 : index
    %1 = vector.load %arg2[%c0_1, %c0_2] : memref<64x256xf32, #tpu.memory_space<vmem>>, vector<64x256xf32>
    %cst = arith.constant dense<0.000000e+00> : vector<8x256xf32>
    %2 = tpu.matmul %0, %1, %cst {dimension_numbers = #tpu.dot_dimension_numbers<[1], [0], [0], [1], [0, 0, 1, 1], [], []>} : vector<8x64xf32>, vector<64x256xf32>, vector<8x256xf32> -> vector<8x256xf32>
    %c0_3 = arith.constant 0 : index
    %c0_4 = arith.constant 0 : index
    %3 = vector.load %arg3[%c0_3, %c0_4] : memref<1x256xf32, #tpu.memory_space<vmem>>, vector<1x256xf32>
    %4 = vector.broadcast %3 : vector<1x256xf32> to vector<8x256xf32>
    %5 = arith.addf %2, %4 : vector<8x256xf32>
    %cst_5 = arith.constant 0.000000e+00 : f32
    %6 = vector.broadcast %cst_5 : f32 to vector<8x256xf32>
    %7 = arith.maximumf %5, %6 : vector<8x256xf32>
    %c0_6 = arith.constant 0 : index
    %c0_7 = arith.constant 0 : index
    %8 = vector.load %arg4[%c0_6, %c0_7] : memref<256x20xf32, #tpu.memory_space<vmem>>, vector<256x20xf32>
    %cst_8 = arith.constant dense<0.000000e+00> : vector<8x20xf32>
    %9 = tpu.matmul %7, %8, %cst_8 {dimension_numbers = #tpu.dot_dimension_numbers<[1], [0], [0], [1], [0, 0, 1, 1], [], []>} : vector<8x256xf32>, vector<256x20xf32>, vector<8x20xf32> -> vector<8x20xf32>
    %c0_9 = arith.constant 0 : index
    %c0_10 = arith.constant 0 : index
    %10 = vector.load %arg5[%c0_9, %c0_10] : memref<1x20xf32, #tpu.memory_space<vmem>>, vector<1x20xf32>
    %11 = vector.broadcast %10 : vector<1x20xf32> to vector<8x20xf32>
    %12 = arith.addf %9, %11 : vector<8x20xf32>
    %c0_11 = arith.constant 0 : index
    %c0_12 = arith.constant 0 : index
    %13 = vector.load %arg6[%c0_11, %c0_12] : memref<8x20xf32, #tpu.memory_space<vmem>>, vector<8x20xf32>
    tpu.vector_store %arg6[%c0_11, %c0_12], %12 {strides = array<i32>} : memref<8x20xf32, #tpu.memory_space<vmem>>, vector<8x20xf32>,
    return
  }
  func.func @transform_0(%arg0: i32) -> (i32, i32) {
    %c0_i32 = arith.constant 0 : i32
    %c0_i32_0 = arith.constant 0 : i32
    return %arg0, %c0_i32 : i32, i32
  }
  func.func @transform_1(%arg0: i32) -> (i32, i32) {
    %c0_i32 = arith.constant 0 : i32
    %c0_i32_0 = arith.constant 0 : i32
    %c0_i32_1 = arith.constant 0 : i32
    return %c0_i32, %c0_i32_0 : i32, i32
  }
  func.func @transform_2(%arg0: i32) -> (i32, i32) {
    %c0_i32 = arith.constant 0 : i32
    %c0_i32_0 = arith.constant 0 : i32
    %c0_i32_1 = arith.constant 0 : i32
    return %c0_i32, %c0_i32_0 : i32, i32
  }
  func.func @transform_3(%arg0: i32) -> (i32, i32) {
    %c0_i32 = arith.constant 0 : i32
    %c0_i32_0 = arith.constant 0 : i32
    %c0_i32_1 = arith.constant 0 : i32
    return %c0_i32, %c0_i32_0 : i32, i32
  }
  func.func @transform_4(%arg0: i32) -> (i32, i32) {
    %c0_i32 = arith.constant 0 : i32
    %c0_i32_0 = arith.constant 0 : i32
    %c0_i32_1 = arith.constant 0 : i32
    return %c0_i32, %c0_i32_0 : i32, i32
  }
  func.func @transform_5(%arg0: i32) -> (i32, i32) {
    %c0_i32 = arith.constant 0 : i32
    %c0_i32_0 = arith.constant 0 : i32
    return %arg0, %c0_i32 : i32, i32
  }
}

module attributes {stable_mosaic.version = 11 : i64} {
  func.func @encoder_kernel(%arg0: i32, %arg1: memref<8x64xf32, #tpu.memory_space<vmem>>, %arg2: memref<64x256xf32, #tpu.memory_space<vmem>>, %arg3: memref<1x256xf32, #tpu.memory_space<vmem>>, %arg4: memref<256x20xf32, #tpu.memory_space<vmem>>, %arg5: memref<1x20xf32, #tpu.memory_space<vmem>>, %arg6: memref<8x20xf32, #tpu.memory_space<vmem>>) attributes {dimension_semantics = [#tpu.dimension_semantics<parallel>], iteration_bounds = array<i64: 4>, scalar_prefetch = 0 : i64, scratch_operands = 0 : i64, tpu.core_type = #tpu.core_type<tc>, window_params = [{transform_indices = @transform_0, window_bounds = array<i64: 8, 64>}, {pipeline_mode = #tpu.pipeline_mode<synchronous>, transform_indices = @transform_1, window_bounds = array<i64: 64, 256>}, {pipeline_mode = #tpu.pipeline_mode<synchronous>, transform_indices = @transform_2, window_bounds = array<i64: 1, 256>}, {pipeline_mode = #tpu.pipeline_mode<synchronous>, transform_indices = @transform_3, window_bounds = array<i64: 256, 20>}, {pipeline_mode = #tpu.pipeline_mode<synchronous>, transform_indices = @transform_4, window_bounds = array<i64: 1, 20>}, {transform_indices = @transform_5, window_bounds = array<i64: 8, 20>}]} {
    %c0 = arith.constant 0 : index
    %c0_0 = arith.constant 0 : index
    %0 = vector.load %arg1[%c0, %c0_0] : memref<8x64xf32, #tpu.memory_space<vmem>>, vector<8x64xf32>
    %c0_1 = arith.constant 0 : index
    %c0_2 = arith.constant 0 : index
    %1 = vector.load %arg2[%c0_1, %c0_2] : memref<64x256xf32, #tpu.memory_space<vmem>>, vector<64x256xf32>
    %cst = arith.constant dense<0.000000e+00> : vector<8x256xf32>
    %2 = tpu.matmul %0, %1, %cst {dimension_numbers = #tpu.dot_dimension_numbers<[1], [0], [0], [1], [0, 0, 1, 1], [], []>} : vector<8x64xf32>, vector<64x256xf32>, vector<8x256xf32> -> vector<8x256xf32>
    %c0_3 = arith.constant 0 : index
    %c0_4 = arith.constant 0 : index
    %3 = vector.load %arg3[%c0_3, %c0_4] : memref<1x256xf32, #tpu.memory_space<vmem>>, vector<1x256xf32>
    %4 = vector.broadcast %3 : vector<1x256xf32> to vector<8x256xf32>
    %5 = arith.addf %2, %4 : vector<8x256xf32>
    %cst_5 = arith.constant 0.000000e+00 : f32
    %6 = vector.broadcast %cst_5 : f32 to vector<8x256xf32>
    %7 = arith.maximumf %5, %6 : vector<8x256xf32>
    %c0_6 = arith.constant 0 : index
    %c0_7 = arith.constant 0 : index
    %8 = vector.load %arg4[%c0_6, %c0_7] : memref<256x20xf32, #tpu.memory_space<vmem>>, vector<256x20xf32>
    %cst_8 = arith.constant dense<0.000000e+00> : vector<8x20xf32>
    %9 = tpu.matmul %7, %8, %cst_8 {dimension_numbers = #tpu.dot_dimension_numbers<[1], [0], [0], [1], [0, 0, 1, 1], [], []>} : vector<8x256xf32>, vector<256x20xf32>, vector<8x20xf32> -> vector<8x20xf32>
    %c0_9 = arith.constant 0 : index
    %c0_10 = arith.constant 0 : index
    %10 = vector.load %arg5[%c0_9, %c0_10] : memref<1x20xf32, #tpu.memory_space<vmem>>, vector<1x20xf32>
    %11 = vector.broadcast %10 : vector<1x20xf32> to vector<8x20xf32>
    %12 = arith.addf %9, %11 : vector<8x20xf32>
    %c0_11 = arith.constant 0 : index
    %c0_12 = arith.constant 0 : index
    %13 = vector.load %arg6[%c0_11, %c0_12] : memref<8x20xf32, #tpu.memory_space<vmem>>, vector<8x20xf32>
    tpu.vector_store %arg6[%c0_11, %c0_12], %12 {strides = array<i32>} : memref<8x20xf32, #tpu.memory_space<vmem>>, vector<8x20xf32>,
    return
  }
  func.func @transform_0(%arg0: i32) -> (i32, i32) {
    %c0_i32 = arith.constant 0 : i32
    %c0_i32_0 = arith.constant 0 : i32
    return %arg0, %c0_i32 : i32, i32
  }
  func.func @transform_1(%arg0: i32) -> (i32, i32) {
    %c0_i32 = arith.constant 0 : i32
    %c0_i32_0 = arith.constant 0 : i32
    %c0_i32_1 = arith.constant 0 : i32
    return %c0_i32, %c0_i32_0 : i32, i32
  }
  func.func @transform_2(%arg0: i32) -> (i32, i32) {
    %c0_i32 = arith.constant 0 : i32
    %c0_i32_0 = arith.constant 0 : i32
    %c0_i32_1 = arith.constant 0 : i32
    return %c0_i32, %c0_i32_0 : i32, i32
  }
  func.func @transform_3(%arg0: i32) -> (i32, i32) {
    %c0_i32 = arith.constant 0 : i32
    %c0_i32_0 = arith.constant 0 : i32
    %c0_i32_1 = arith.constant 0 : i32
    return %c0_i32, %c0_i32_0 : i32, i32
  }
  func.func @transform_4(%arg0: i32) -> (i32, i32) {
    %c0_i32 = arith.constant 0 : i32
    %c0_i32_0 = arith.constant 0 : i32
    %c0_i32_1 = arith.constant 0 : i32
    return %c0_i32, %c0_i32_0 : i32, i32
  }
  func.func @transform_5(%arg0: i32) -> (i32, i32) {
    %c0_i32 = arith.constant 0 : i32
    %c0_i32_0 = arith.constant 0 : i32
    return %arg0, %c0_i32 : i32, i32
  }
}

</mosaic_0001>

<bundles_post_ra>
// kernel: tpu_custom_call.1
= control target key start
LH: loop header
LB: loop body
LE: loop exit
PB: predicated region body
PF: predicated region fallthrough
CT: control target
= control target key end

     0   :  { %s584_s18 = smov 0   ;;  %s758_s0 = inlined_call_operand.vmem [shape: f32[32,64], index: 0, kind: input, shape index: {}]   ;;  %s759_s1 = inlined_call_operand.vmem [shape: f32[64,256], index: 1, kind: input, shape index: {}]   ;;  %s760_s2 = inlined_call_operand.vmem [shape: f32[1,256], index: 2, kind: input, shape index: {}]   ;;  %s761_s3 = inlined_call_operand.vmem [shape: f32[256,20], index: 3, kind: input, shape index: {}]   ;;  %s762_s4 = inlined_call_operand.vmem [shape: f32[1,20], index: 4, kind: input, shape index: {}]   ;;  %s763_s5 = inlined_call_operand.vmem [shape: f32[32,20], index: 5, kind: output, shape index: {}]  }
   0x1 LB: > { %s490_s19 = sadd.s32 4294967295, %s551_s18   ;;  %p494_p0 = scmp.ge.s32.totalorder %s551_s18, 1  ;;  %s551_s18 = sphi %s584_s18, %s15_s18  }
   0x2   : > { %p186_p1 = scmp.lt.s32.totalorder %s551_s18, 5 }
   0x4   : > { %p187_p2 = pnand %p494_p0, %p186_p1 }
   0x5   : > { %p212_p3 = scmp.lt.s32.totalorder (!%p187_p2), %s490_s19, 3 }
   0x6   : > { %190 = sbr.rel (%p187_p2) target bundleno = 428 (0x1ac), region = 40 }
   0xb   : > { %v236_v0 = vld [vmem:[%s759_s1 + $0x78] sm:$0xff]  ;;  %v235_v1 = vld [vmem:[%s759_s1 + $0x70] sm:$0xff]  ;;  %v234_v2 = vld [vmem:[%s759_s1 + $0x68] sm:$0xff]  ;;  %v553_v4 = vmov 0.0   ;;  %s765_s19 = smov (!%p212_p3, %s490_s19), 3  ;;  %vm249_vm0 = vcmask 523264   ;;  %v239_v50 = vlaneseq }
   0xc   : > { %269 = vmatprep.subr.mxu0 %v236_v0  ;;  %v233_v3 = vld [vmem:[%s759_s1 + $0x60] sm:$0xff]  ;;  %317 = vmatprep.mubr.f32.mxu0 %v553_v4  ;;  %v232_v5 = vld [vmem:[%s759_s1 + $0x58] sm:$0xff]  ;;  %v231_v6 = vld [vmem:[%s759_s1 + $0x50] sm:$0xff]  ;;  %s495_s29 = sshll.u32 %s765_s19, 3  ;;  %vm435_vm1 = vcmask 162816  }
   0xd   : > { %270 = vmatpush1.msra.mxu0 %v235_v1  ;;  %v230_v7 = vld [vmem:[%s759_s1 + $0x48] sm:$0xff]  ;;  %v229_v8 = vld [vmem:[%s759_s1 + $0x40] sm:$0xff]  ;;  %v357_v9 = vld [vmem:[%s761_s3 + $0xf8] sm:$0xff]  ;;  %s215_s21 = scalar_lea.vmem %s758_s0, %s495_s29  ;;  %v240_v51 = vshrl.u32 %v239_v50, 7  ;;  %s219_s12 = scalar_lea.vmem %s763_s5, %s495_s29 }
   0xe   : > { %271 = vmatprep.subr.mxu0 %v234_v2  ;;  %v341_v10 = vld [vmem:[%s761_s3 + $0x78] sm:$0xff]  ;;  %501 = vmatprep.subr.mxu1 %v357_v9  ;;  %v356_v12 = vld [vmem:[%s761_s3 + $0xf0] sm:$0xff]  ;;  %v355_v15 = vld [vmem:[%s761_s3 + $0xe8] sm:$0xff] }
   0xf   : > { %272 = vmatpush1.msra.mxu0 %v233_v3  ;;  %v228_v11 = vld [vmem:[%s759_s1 + $0x38] sm:$0xff]  ;;  %v340_v13 = vld [vmem:[%s761_s3 + $0x70] sm:$0xff]  ;;  %502 = vmatpush3.msra.mxu1 %v341_v10  ;;  %v226_v16 = vld [vmem:[%s759_s1 + $0x28] sm:$0xff]  ;;  %v241_v52 = vsub.s32 0, %v240_v51  ;;  %v245_v54 = vsub.s32 1, %v240_v51 }
  0x10   : > { %273 = vmatprep.subr.mxu0 %v232_v5  ;;  %v227_v14 = vld [vmem:[%s759_s1 + $0x30] sm:$0xff]  ;;  %503 = vmatprep.subr.mxu1 %v356_v12  ;;  %v339_v17 = vld [vmem:[%s761_s3 + $0x68] sm:$0xff]  ;;  %v225_v18 = vld [vmem:[%s759_s1 + $0x20] sm:$0xff] }
  0x11   : > { %274 = vmatpush1.msra.mxu0 %v231_v6  ;;  %504 = vmatpush3.msra.mxu1 %v340_v13  ;;  %v354_v19 = vld [vmem:[%s761_s3 + $0xe0] sm:$0xff]  ;;  %v224_v20 = vld [vmem:[%s759_s1 + $0x18] sm:$0xff]  ;;  %v223_v22 = vld [vmem:[%s759_s1 + $0x10] sm:$0xff] }
  0x12   : > { %275 = vmatprep.subr.mxu0 %v230_v7  ;;  %505 = vmatprep.subr.mxu1 %v355_v15  ;;  %v338_v21 = vld [vmem:[%s761_s3 + $0x60] sm:$0xff]  ;;  %v353_v23 = vld [vmem:[%s761_s3 + $0xd8] sm:$0xff]  ;;  %v222_v24 = vld [vmem:[%s759_s1 + $0x8] sm:$0xff] }
  0x13   : > { %276 = vmatpush1.msra.mxu0 %v229_v8  ;;  %506 = vmatpush3.msra.mxu1 %v339_v17  ;;  %v337_v25 = vld [vmem:[%s761_s3 + $0x58] sm:$0xff]  ;;  %v221_v26 = vld [vmem:[%s759_s1] sm:$0xff]  ;;  %v352_v27 = vld [vmem:[%s761_s3 + $0xd0] sm:$0xff] }
  0x14   : > { %277 = vmatprep.subr.mxu0 %v228_v11  ;;  %507 = vmatprep.subr.mxu1 %v354_v19  ;;  %v220_v28 = vld [vmem:[%s215_s21] sm:$0xff]  ;;  %v336_v29 = vld [vmem:[%s761_s3 + $0x50] sm:$0xff]  ;;  %v351_v30 = vld [vmem:[%s761_s3 + $0xc8] sm:$0xff] }
  0x15   : > { %278 = vmatpush1.msra.mxu0 %v227_v14  ;;  %508 = vmatpush3.msra.mxu1 %v338_v21  ;;  %v335_v31 = vld [vmem:[%s761_s3 + $0x48] sm:$0xff]  ;;  %v350_v32 = vld [vmem:[%s761_s3 + $0xc0] sm:$0xff]  ;;  %v349_v34 = vld [vmem:[%s761_s3 + $0xb8] sm:$0xff] }
  0x16   : > { %279 = vmatprep.subr.mxu0 %v226_v16  ;;  %509 = vmatprep.subr.mxu1 %v353_v23  ;;  %v334_v33 = vld [vmem:[%s761_s3 + $0x40] sm:$0xff]  ;;  %v333_v35 = vld [vmem:[%s761_s3 + $0x38] sm:$0xff]  ;;  %v348_v36 = vld [vmem:[%s761_s3 + $0xb0] sm:$0xff] }
  0x17   : > { %280 = vmatpush1.msra.mxu0 %v225_v18  ;;  %510 = vmatpush3.msra.mxu1 %v337_v25  ;;  %v332_v37 = vld [vmem:[%s761_s3 + $0x30] sm:$0xff]  ;;  %v347_v38 = vld [vmem:[%s761_s3 + $0xa8] sm:$0xff]  ;;  %v346_v40 = vld [vmem:[%s761_s3 + $0xa0] sm:$0xff] }
  0x18   : > { %281 = vmatprep.subr.mxu0 %v224_v20  ;;  %511 = vmatprep.subr.mxu1 %v352_v27  ;;  %v331_v39 = vld [vmem:[%s761_s3 + $0x28] sm:$0xff]  ;;  %v330_v41 = vld [vmem:[%s761_s3 + $0x20] sm:$0xff]  ;;  %v345_v42 = vld [vmem:[%s761_s3 + $0x98] sm:$0xff] }
  0x19   : > { %282 = vmatpush1.msra.mxu0 %v223_v22  ;;  %512 = vmatpush3.msra.mxu1 %v336_v29  ;;  %v329_v43 = vld [vmem:[%s761_s3 + $0x18] sm:$0xff]  ;;  %v344_v44 = vld [vmem:[%s761_s3 + $0x90] sm:$0xff]  ;;  %v343_v46 = vld [vmem:[%s761_s3 + $0x88] sm:$0xff] }
  0x1a   : > { %283 = vmatprep.subr.mxu0 %v222_v24  ;;  %513 = vmatprep.subr.mxu1 %v351_v30  ;;  %v328_v45 = vld [vmem:[%s761_s3 + $0x10] sm:$0xff]  ;;  %v327_v47 = vld [vmem:[%s761_s3 + $0x8] sm:$0xff]  ;;  %v342_v48 = vld [vmem:[%s761_s3 + $0x80] sm:$0xff] }
  0x1b   : > { %284 = vmatpush1.msra.mxu0 %v221_v26  ;;  %514 = vmatpush3.msra.mxu1 %v335_v31  ;;  %v326_v49 = vld [vmem:[%s761_s3] sm:$0xff] }
  0x1c   : > { %497 = vmatmul.mubr.msk.f32.vlgmr.msra.gmra.mxu0 %vm249_vm0, %v220_v28  ;;  %515 = vmatprep.subr.mxu1 %v350_v32  ;;  %v237_v53 = vld [vmem:[%s760_s2] sm:$0x3] }
  0x1d   : > { %516 = vmatpush3.msra.mxu1 %v334_v33  ;;  %v242_v55 = vrot.slane %v237_v53, %v241_v52  ;;  %v246_v56 = vrot.slane %v237_v53, %v245_v54  ;;  %v498_v0 = vld [vmem:[%s762_s4] ss:$0 sm:$0xff] }
  0x1e   : > { %517 = vmatprep.subr.mxu1 %v349_v34 }
  0x1f   : > { %518 = vmatpush3.msra.mxu1 %v333_v35 }
  0x20   : > { %519 = vmatprep.subr.mxu1 %v348_v36 }
  0x21   : > { %520 = vmatpush3.msra.mxu1 %v332_v37 }
  0x22   : > { %521 = vmatprep.subr.mxu1 %v347_v38 }
  0x23   : > { %522 = vmatpush3.msra.mxu1 %v331_v39 }
  0x24   : > { %523 = vmatprep.subr.mxu1 %v346_v40 }
  0x25   : > { %524 = vmatpush3.msra.mxu1 %v330_v41 }
  0x26   : > { %525 = vmatprep.subr.mxu1 %v345_v42 }
  0x27   : > { %526 = vmatpush3.msra.mxu1 %v329_v43 }
  0x28   : > { %527 = vmatprep.subr.mxu1 %v344_v44 }
  0x29   : > { %528 = vmatpush3.msra.mxu1 %v328_v45 }
  0x2a   : > { %529 = vmatprep.subr.mxu1 %v343_v46 }
  0x2b   : > { %530 = vmatpush3.msra.mxu1 %v327_v47 }
  0x2c   : > { %531 = vmatprep.subr.mxu1 %v342_v48 }
  0x2d   : > { %532 = vmatpush3.msra.mxu1 %v326_v49 }
  0xdc   : > { %v319_v57 = vpop.f32.mrf.mxu0 }
  0xdd   : > { %v320_v58 = vadd.f32 %v319_v57, %v242_v55 }
  0xde   : > { %v321_v59 = vpop.f32.mrf.mxu0 }
  0xdf   : > { %v322_v60 = vadd.f32 %v321_v59, %v246_v56  ;;  %v324_v62 = vmax.f32 %v320_v58, 0.0 }
  0xe1   : > { %v325_v61 = vmax.f32 %v322_v60, 0.0 }
  0xe3   : > { %429 = vmatprep.mubr.f32.mxu1 %v325_v61 }
  0xe4   : > { %430 = vmatmul.mubr.f32.vlgmr.msra.gmra.mxu1 %v324_v62 }
 0x1a4   : > { %v533_v63 = vpop.f32.mrf.mxu1 }
 0x1a6   : > { %v534_v1 = vpop.f32.mrf.mxu1 }
 0x1a7   : > { %v535_v2 = vadd.f32 %v534_v1, %v533_v63 }
 0x1a9   : > { %v432_v3 = vadd.f32 %v535_v2, %v498_v0 }
 0x1ab   : > { %436 = vst.msk [vmem:[%s219_s12] sm:$0xff] %vm435_vm1, %v432_v3 }
 0x1ac PF: > { %s15_s18 = sadd.s32 1, %s551_s18  }
 0x1ad   : > { %p12_p4 = scmp.ge.s32.totalorder %s15_s18, 6  }
 0x1af   :  { %14 = sbr.rel (!%p12_p4) target bundleno = 1 (0x1), region = 70 }

// kernel: tpu_custom_call.1
= control target key start
LH: loop header
LB: loop body
LE: loop exit
PB: predicated region body
PF: predicated region fallthrough
CT: control target
= control target key end

     0   :  { %s584_s18 = smov 0   ;;  %s758_s0 = inlined_call_operand.vmem [shape: f32[32,64], index: 0, kind: input, shape index: {}]   ;;  %s759_s1 = inlined_call_operand.vmem [shape: f32[64,256], index: 1, kind: input, shape index: {}]   ;;  %s760_s2 = inlined_call_operand.vmem [shape: f32[1,256], index: 2, kind: input, shape index: {}]   ;;  %s761_s3 = inlined_call_operand.vmem [shape: f32[256,20], index: 3, kind: input, shape index: {}]   ;;  %s762_s4 = inlined_call_operand.vmem [shape: f32[1,20], index: 4, kind: input, shape index: {}]   ;;  %s763_s5 = inlined_call_operand.vmem [shape: f32[32,20], index: 5, kind: output, shape index: {}]  }
   0x1 LB: > { %s490_s19 = sadd.s32 4294967295, %s551_s18   ;;  %p494_p0 = scmp.ge.s32.totalorder %s551_s18, 1  ;;  %s551_s18 = sphi %s584_s18, %s15_s18  }
   0x2   : > { %p186_p1 = scmp.lt.s32.totalorder %s551_s18, 5 }
   0x4   : > { %p187_p2 = pnand %p494_p0, %p186_p1 }
   0x5   : > { %p212_p3 = scmp.lt.s32.totalorder (!%p187_p2), %s490_s19, 3 }
   0x6   : > { %190 = sbr.rel (%p187_p2) target bundleno = 428 (0x1ac), region = 40 }
   0xb   : > { %v236_v0 = vld [vmem:[%s759_s1 + $0x78] sm:$0xff]  ;;  %v235_v1 = vld [vmem:[%s759_s1 + $0x70] sm:$0xff]  ;;  %v234_v2 = vld [vmem:[%s759_s1 + $0x68] sm:$0xff]  ;;  %v553_v4 = vmov 0.0   ;;  %s765_s19 = smov (!%p212_p3, %s490_s19), 3  ;;  %vm249_vm0 = vcmask 523264   ;;  %v239_v50 = vlaneseq }
   0xc   : > { %269 = vmatprep.subr.mxu0 %v236_v0  ;;  %v233_v3 = vld [vmem:[%s759_s1 + $0x60] sm:$0xff]  ;;  %317 = vmatprep.mubr.f32.mxu0 %v553_v4  ;;  %v232_v5 = vld [vmem:[%s759_s1 + $0x58] sm:$0xff]  ;;  %v231_v6 = vld [vmem:[%s759_s1 + $0x50] sm:$0xff]  ;;  %s495_s29 = sshll.u32 %s765_s19, 3  ;;  %vm435_vm1 = vcmask 162816  }
   0xd   : > { %270 = vmatpush1.msra.mxu0 %v235_v1  ;;  %v230_v7 = vld [vmem:[%s759_s1 + $0x48] sm:$0xff]  ;;  %v229_v8 = vld [vmem:[%s759_s1 + $0x40] sm:$0xff]  ;;  %v357_v9 = vld [vmem:[%s761_s3 + $0xf8] sm:$0xff]  ;;  %s215_s21 = scalar_lea.vmem %s758_s0, %s495_s29  ;;  %v240_v51 = vshrl.u32 %v239_v50, 7  ;;  %s219_s12 = scalar_lea.vmem %s763_s5, %s495_s29 }
   0xe   : > { %271 = vmatprep.subr.mxu0 %v234_v2  ;;  %v341_v10 = vld [vmem:[%s761_s3 + $0x78] sm:$0xff]  ;;  %501 = vmatprep.subr.mxu1 %v357_v9  ;;  %v356_v12 = vld [vmem:[%s761_s3 + $0xf0] sm:$0xff]  ;;  %v355_v15 = vld [vmem:[%s761_s3 + $0xe8] sm:$0xff] }
   0xf   : > { %272 = vmatpush1.msra.mxu0 %v233_v3  ;;  %v228_v11 = vld [vmem:[%s759_s1 + $0x38] sm:$0xff]  ;;  %v340_v13 = vld [vmem:[%s761_s3 + $0x70] sm:$0xff]  ;;  %502 = vmatpush3.msra.mxu1 %v341_v10  ;;  %v226_v16 = vld [vmem:[%s759_s1 + $0x28] sm:$0xff]  ;;  %v241_v52 = vsub.s32 0, %v240_v51  ;;  %v245_v54 = vsub.s32 1, %v240_v51 }
  0x10   : > { %273 = vmatprep.subr.mxu0 %v232_v5  ;;  %v227_v14 = vld [vmem:[%s759_s1 + $0x30] sm:$0xff]  ;;  %503 = vmatprep.subr.mxu1 %v356_v12  ;;  %v339_v17 = vld [vmem:[%s761_s3 + $0x68] sm:$0xff]  ;;  %v225_v18 = vld [vmem:[%s759_s1 + $0x20] sm:$0xff] }
  0x11   : > { %274 = vmatpush1.msra.mxu0 %v231_v6  ;;  %504 = vmatpush3.msra.mxu1 %v340_v13  ;;  %v354_v19 = vld [vmem:[%s761_s3 + $0xe0] sm:$0xff]  ;;  %v224_v20 = vld [vmem:[%s759_s1 + $0x18] sm:$0xff]  ;;  %v223_v22 = vld [vmem:[%s759_s1 + $0x10] sm:$0xff] }
  0x12   : > { %275 = vmatprep.subr.mxu0 %v230_v7  ;;  %505 = vmatprep.subr.mxu1 %v355_v15  ;;  %v338_v21 = vld [vmem:[%s761_s3 + $0x60] sm:$0xff]  ;;  %v353_v23 = vld [vmem:[%s761_s3 + $0xd8] sm:$0xff]  ;;  %v222_v24 = vld [vmem:[%s759_s1 + $0x8] sm:$0xff] }
  0x13   : > { %276 = vmatpush1.msra.mxu0 %v229_v8  ;;  %506 = vmatpush3.msra.mxu1 %v339_v17  ;;  %v337_v25 = vld [vmem:[%s761_s3 + $0x58] sm:$0xff]  ;;  %v221_v26 = vld [vmem:[%s759_s1] sm:$0xff]  ;;  %v352_v27 = vld [vmem:[%s761_s3 + $0xd0] sm:$0xff] }
  0x14   : > { %277 = vmatprep.subr.mxu0 %v228_v11  ;;  %507 = vmatprep.subr.mxu1 %v354_v19  ;;  %v220_v28 = vld [vmem:[%s215_s21] sm:$0xff]  ;;  %v336_v29 = vld [vmem:[%s761_s3 + $0x50] sm:$0xff]  ;;  %v351_v30 = vld [vmem:[%s761_s3 + $0xc8] sm:$0xff] }
  0x15   : > { %278 = vmatpush1.msra.mxu0 %v227_v14  ;;  %508 = vmatpush3.msra.mxu1 %v338_v21  ;;  %v335_v31 = vld [vmem:[%s761_s3 + $0x48] sm:$0xff]  ;;  %v350_v32 = vld [vmem:[%s761_s3 + $0xc0] sm:$0xff]  ;;  %v349_v34 = vld [vmem:[%s761_s3 + $0xb8] sm:$0xff] }
  0x16   : > { %279 = vmatprep.subr.mxu0 %v226_v16  ;;  %509 = vmatprep.subr.mxu1 %v353_v23  ;;  %v334_v33 = vld [vmem:[%s761_s3 + $0x40] sm:$0xff]  ;;  %v333_v35 = vld [vmem:[%s761_s3 + $0x38] sm:$0xff]  ;;  %v348_v36 = vld [vmem:[%s761_s3 + $0xb0] sm:$0xff] }
  0x17   : > { %280 = vmatpush1.msra.mxu0 %v225_v18  ;;  %510 = vmatpush3.msra.mxu1 %v337_v25  ;;  %v332_v37 = vld [vmem:[%s761_s3 + $0x30] sm:$0xff]  ;;  %v347_v38 = vld [vmem:[%s761_s3 + $0xa8] sm:$0xff]  ;;  %v346_v40 = vld [vmem:[%s761_s3 + $0xa0] sm:$0xff] }
  0x18   : > { %281 = vmatprep.subr.mxu0 %v224_v20  ;;  %511 = vmatprep.subr.mxu1 %v352_v27  ;;  %v331_v39 = vld [vmem:[%s761_s3 + $0x28] sm:$0xff]  ;;  %v330_v41 = vld [vmem:[%s761_s3 + $0x20] sm:$0xff]  ;;  %v345_v42 = vld [vmem:[%s761_s3 + $0x98] sm:$0xff] }
  0x19   : > { %282 = vmatpush1.msra.mxu0 %v223_v22  ;;  %512 = vmatpush3.msra.mxu1 %v336_v29  ;;  %v329_v43 = vld [vmem:[%s761_s3 + $0x18] sm:$0xff]  ;;  %v344_v44 = vld [vmem:[%s761_s3 + $0x90] sm:$0xff]  ;;  %v343_v46 = vld [vmem:[%s761_s3 + $0x88] sm:$0xff] }
  0x1a   : > { %283 = vmatprep.subr.mxu0 %v222_v24  ;;  %513 = vmatprep.subr.mxu1 %v351_v30  ;;  %v328_v45 = vld [vmem:[%s761_s3 + $0x10] sm:$0xff]  ;;  %v327_v47 = vld [vmem:[%s761_s3 + $0x8] sm:$0xff]  ;;  %v342_v48 = vld [vmem:[%s761_s3 + $0x80] sm:$0xff] }
  0x1b   : > { %284 = vmatpush1.msra.mxu0 %v221_v26  ;;  %514 = vmatpush3.msra.mxu1 %v335_v31  ;;  %v326_v49 = vld [vmem:[%s761_s3] sm:$0xff] }
  0x1c   : > { %497 = vmatmul.mubr.msk.f32.vlgmr.msra.gmra.mxu0 %vm249_vm0, %v220_v28  ;;  %515 = vmatprep.subr.mxu1 %v350_v32  ;;  %v237_v53 = vld [vmem:[%s760_s2] sm:$0x3] }
  0x1d   : > { %516 = vmatpush3.msra.mxu1 %v334_v33  ;;  %v242_v55 = vrot.slane %v237_v53, %v241_v52  ;;  %v246_v56 = vrot.slane %v237_v53, %v245_v54  ;;  %v498_v0 = vld [vmem:[%s762_s4] ss:$0 sm:$0xff] }
  0x1e   : > { %517 = vmatprep.subr.mxu1 %v349_v34 }
  0x1f   : > { %518 = vmatpush3.msra.mxu1 %v333_v35 }
  0x20   : > { %519 = vmatprep.subr.mxu1 %v348_v36 }
  0x21   : > { %520 = vmatpush3.msra.mxu1 %v332_v37 }
  0x22   : > { %521 = vmatprep.subr.mxu1 %v347_v38 }
  0x23   : > { %522 = vmatpush3.msra.mxu1 %v331_v39 }
  0x24   : > { %523 = vmatprep.subr.mxu1 %v346_v40 }
  0x25   : > { %524 = vmatpush3.msra.mxu1 %v330_v41 }
  0x26   : > { %525 = vmatprep.subr.mxu1 %v345_v42 }
  0x27   : > { %526 = vmatpush3.msra.mxu1 %v329_v43 }
  0x28   : > { %527 = vmatprep.subr.mxu1 %v344_v44 }
  0x29   : > { %528 = vmatpush3.msra.mxu1 %v328_v45 }
  0x2a   : > { %529 = vmatprep.subr.mxu1 %v343_v46 }
  0x2b   : > { %530 = vmatpush3.msra.mxu1 %v327_v47 }
  0x2c   : > { %531 = vmatprep.subr.mxu1 %v342_v48 }
  0x2d   : > { %532 = vmatpush3.msra.mxu1 %v326_v49 }
  0xdc   : > { %v319_v57 = vpop.f32.mrf.mxu0 }
  0xdd   : > { %v320_v58 = vadd.f32 %v319_v57, %v242_v55 }
  0xde   : > { %v321_v59 = vpop.f32.mrf.mxu0 }
  0xdf   : > { %v322_v60 = vadd.f32 %v321_v59, %v246_v56  ;;  %v324_v62 = vmax.f32 %v320_v58, 0.0 }
  0xe1   : > { %v325_v61 = vmax.f32 %v322_v60, 0.0 }
  0xe3   : > { %429 = vmatprep.mubr.f32.mxu1 %v325_v61 }
  0xe4   : > { %430 = vmatmul.mubr.f32.vlgmr.msra.gmra.mxu1 %v324_v62 }
 0x1a4   : > { %v533_v63 = vpop.f32.mrf.mxu1 }
 0x1a6   : > { %v534_v1 = vpop.f32.mrf.mxu1 }
 0x1a7   : > { %v535_v2 = vadd.f32 %v534_v1, %v533_v63 }
 0x1a9   : > { %v432_v3 = vadd.f32 %v535_v2, %v498_v0 }
 0x1ab   : > { %436 = vst.msk [vmem:[%s219_s12] sm:$0xff] %vm435_vm1, %v432_v3 }
 0x1ac PF: > { %s15_s18 = sadd.s32 1, %s551_s18  }
 0x1ad   : > { %p12_p4 = scmp.ge.s32.totalorder %s15_s18, 6  }
 0x1af   :  { %14 = sbr.rel (!%p12_p4) target bundleno = 1 (0x1), region = 70 }

</bundles_post_ra>
